<compile_context>
chip_gen: v5e
topology: v5e:2x2
jax: 0.10.0
libtpu: 0.0.40
codegen_flags: <defaults>
</compile_context>

<pallas_src>
import functools

import jax
import jax.numpy as jnp
from jax.experimental import pallas as pl
from jax.experimental.pallas import tpu as pltpu

LN_EPS = 1e-5  # PyTorch nn.LayerNorm default


def _vmem_capacity_bytes():
    """Physical VMEM per TensorCore; falls back to 128 MiB if unknown."""
    try:
        info = pltpu.get_tpu_info()
        cap = int(getattr(info, "vmem_capacity_bytes", 0) or 0)
        if cap > 0:
            return cap
    except Exception:
        pass
    return 128 * 1024 * 1024


def _patch_expand_kernel(x_ref, w_ref, b_ref, o_ref, *, W, Co, compute_dtype,
                         dense_store):
    # x_ref : (ts, ht*W, C)              input voxels (ht rows of W voxels each)
    # w_ref : (G, C, (4//G)*2*Co)        folded weights (G == 1 -> fused matmul)
    # b_ref : (G, 1, (4//G)*2*Co)        folded bias (f32)
    # o_ref : dense : (ts, 2, ht, 2*W*2*Co)    order (s, ks, h, [kh, w, kw, co])
    #         legacy: (ts, 2, ht, 2, W, 2*Co)  order (s, ks, h, kh, w, [kw, co])
    ts, hwt, C = x_ref.shape
    ht = hwt // W
    rows = ts * hwt
    two_co = 2 * Co
    w_tc = W * two_co

    # LayerNorm statistics in f32 (biased variance, PyTorch eps), single pass.
    x = x_ref[...].astype(jnp.float32).reshape(rows, C)
    mean = jnp.mean(x, axis=-1, keepdims=True)
    xc = x - mean
    var = jnp.mean(xc * xc, axis=-1, keepdims=True)
    xn = (xc * jax.lax.rsqrt(var + LN_EPS)).astype(compute_dtype)

    n_groups = w_ref.shape[0]
    slabs_per_group = 4 // n_groups
    for g in range(n_groups):
        # One MXU matmul per group; LN affine + conv bias are pre-folded.
        y = jnp.dot(xn, w_ref[g], preferred_element_type=jnp.float32)
        y = y + b_ref[g]
        for t in range(slabs_per_group):
            j = g * slabs_per_group + t
            ks, kh = divmod(j, 2)
            yj = y[:, t * two_co:(t + 1) * two_co]            # (rows, 2*Co)
            if dense_store:
                # Lane-dense store: last block dim is 2*W*2*Co wide.
                yj = yj.reshape(ts, ht, w_tc).astype(o_ref.dtype)
                o_ref[:, ks, :, kh * w_tc:(kh + 1) * w_tc] = yj
            else:
                yj = yj.reshape(ts, ht, W, two_co).astype(o_ref.dtype)
                o_ref[:, ks, :, kh, :, :] = yj


def _fold_params(gamma, beta, weight, bias, C, Co, compute_dtype, fuse):
    """Fold LN affine + conv bias into matmul weight/bias slabs."""
    f32 = jnp.float32
    g = gamma.astype(f32)
    be = beta.astype(f32)
    wf = weight.astype(f32)
    bf = bias.astype(f32)
    # LN(x) @ W + b  ==  xhat @ (gamma * W)  +  (beta @ W + bias)
    w_slabs, b_slabs = [], []
    for ks in range(2):
        for kh in range(2):
            # columns ordered (kw, co)
            wj = jnp.transpose(wf[:, :, ks, kh, :], (0, 2, 1)).reshape(C, 2 * Co)
            b_slabs.append(be @ wj + jnp.tile(bf, 2))        # (2*Co,)
            w_slabs.append(g[:, None] * wj)                  # (C, 2*Co)
    if fuse:
        w_all = jnp.concatenate(w_slabs, axis=1)[None]            # (1, C, 8*Co)
        b_all = jnp.concatenate(b_slabs, axis=0)[None, None, :]   # (1, 1, 8*Co)
    else:
        w_all = jnp.stack(w_slabs, axis=0)                        # (4, C, 2*Co)
        b_all = jnp.stack(b_slabs, axis=0)[:, None, :]            # (4, 1, 2*Co)
    return w_all.astype(compute_dtype), b_all.astype(f32)


def _select_tiles(BS, H, W, C, Co, in_item, out_item, cd_item, target_rows,
                  budget):
    """Pick (#(b,s) slabs per step, #h rows per step) under a VMEM budget."""

    def usage(rows):
        blocks = 2 * rows * C * in_item + 2 * rows * 8 * Co * out_item  # i/o blocks (x2 buffers)
        consts = 2 * (4 * C * 2 * Co * cd_item + 4 * 2 * Co * 4)        # folded weight/bias
        temps = rows * (C * (4 + cd_item) + 8 * Co * (4 + out_item))    # in-kernel temporaries
        return blocks + consts + temps

    HW = H * W
    ts, ht = 1, H
    if usage(HW) > budget:
        # A single (b,s) slab is already too big: tile the H axis instead.
        # Only divisors of H that are multiples of 8 keep the (8,128) block
        # layout rules satisfied and the grid exact.
        for cand in sorted((h for h in range(8, H, 8) if H % h == 0),
                           reverse=True):
            ht = cand
            if usage(cand * W) <= budget:
                break
        return ts, ht, usage(ts * ht * W)

    # Grow the number of whole (b,s) slabs per step.  Keep at least 4 grid
    # steps on the "parallel" axis (feeds both v7x TensorCores and keeps the
    # pipeline busy), use exact divisors of B*S (no ragged edge blocks), and
    # stop once the matmul M dimension reaches ~target_rows.
    max_ts = max(1, BS // 4)
    for cand in range(1, max_ts + 1):
        if BS % cand:
            continue
        if usage(cand * HW) > budget:
            break
        ts = cand
        if cand * HW >= target_rows:
            break
    return ts, ht, usage(ts * ht * W)


def _pallas_forward(x3, w_all, b_all, *, BS, H, W, C, Co, ts, ht, dense_store,
                    compute_dtype, out_dtype, vmem_limit):
    two_co = 2 * Co
    grid = (BS // ts, H // ht)
    kernel = functools.partial(_patch_expand_kernel, W=W, Co=Co,
                               compute_dtype=compute_dtype,
                               dense_store=dense_store)
    if dense_store:
        out_shape = jax.ShapeDtypeStruct((BS, 2, H, 2 * W * two_co), out_dtype)
        out_spec = pl.BlockSpec((ts, 2, ht, 2 * W * two_co),
                                lambda i, j: (i, 0, j, 0))
    else:
        out_shape = jax.ShapeDtypeStruct((BS, 2, H, 2, W, two_co), out_dtype)
        out_spec = pl.BlockSpec((ts, 2, ht, 2, W, two_co),
                                lambda i, j: (i, 0, j, 0, 0, 0))
    return pl.pallas_call(
        kernel,
        out_shape=out_shape,
        grid_spec=pltpu.PrefetchScalarGridSpec(
            num_scalar_prefetch=0,
            grid=grid,
            in_specs=[
                pl.BlockSpec((ts, ht * W, C), lambda i, j: (i, j, 0)),
                pl.BlockSpec(w_all.shape, lambda i, j: (0, 0, 0)),
                pl.BlockSpec(b_all.shape, lambda i, j: (0, 0, 0)),
            ],
            out_specs=out_spec,
        ),
        compiler_params=pltpu.CompilerParams(
            dimension_semantics=("parallel", "parallel"),
            vmem_limit_bytes=int(vmem_limit),
        ),
    )(x3, w_all, b_all)


def patch_expanding(x, S, H, W, gamma, beta, weight, bias, *,
                    compute_dtype=None, target_rows=None,
                    vmem_limit_bytes=None):
    """Forward of nnFormer's Patch_Expanding.

    x      : (B, L, C) with L == S*H*W
    gamma  : (C,)   LayerNorm weight        beta : (C,)  LayerNorm bias
    weight : (C, C//2, 2, 2, 2)  ConvTranspose3d weight (PyTorch layout)
    bias   : (C//2,)             ConvTranspose3d bias
    returns: (B, 8*S*H*W, C//2)

    compute_dtype: dtype of the MXU matmul operands (accumulation is always
      f32).  Defaults to x.dtype; jnp.bfloat16 is recommended for f32 inputs
      on v5e/v6e (bf16-native MXU) at a small accuracy cost.
    """
    B, L, C = x.shape
    assert L == S * H * W, "input feature has wrong size"
    Co = C // 2
    assert weight.shape == (C, Co, 2, 2, 2), weight.shape

    if compute_dtype is None:
        compute_dtype = x.dtype
    out_dtype = x.dtype
    two_co = 2 * Co

    # Fuse the four (ks,kh) matmuls into one (C, 8*Co) matmul when the 2*Co
    # column groups are lane-aligned (free result slices); otherwise keep four
    # narrower matmuls and never slice the result at unaligned lane offsets.
    fuse = (two_co % 128 == 0)
    w_all, b_all = _fold_params(gamma, beta, weight, bias, C, Co,
                                compute_dtype, fuse)

    BS = B * S
    in_item = x.dtype.itemsize
    out_item = jnp.dtype(out_dtype).itemsize
    cd_item = jnp.dtype(compute_dtype).itemsize

    # Generation-aware VMEM sizing: 128 MiB/core on v5e/v6e, 64 MiB on v7x.
    vmem_cap = _vmem_capacity_bytes()
    vmem_limit = vmem_limit_bytes or min(vmem_cap // 2, 64 * 1024 * 1024)
    budget = (vmem_limit * 3) // 4                # headroom for padding / misc
    if target_rows is None:
        target_rows = 1024 if vmem_cap >= 96 * 1024 * 1024 else 512

    ts, ht, need = _select_tiles(BS, H, W, C, Co, in_item, out_item, cd_item,
                                 target_rows, budget)
    if need > budget:          # even the smallest tile is over budget
        vmem_limit = min((vmem_cap * 7) // 8, max(vmem_limit, need + (4 << 20)))

    x3 = x.reshape(BS, H * W, C)      # free view (leading-dim regrouping only)
    run = functools.partial(_pallas_forward, x3, w_all, b_all, BS=BS, H=H, W=W,
                            C=C, Co=Co, ts=ts, ht=ht,
                            compute_dtype=compute_dtype, out_dtype=out_dtype,
                            vmem_limit=vmem_limit)
    try:
        out = run(dense_store=True)
        jax.block_until_ready(out)     # surface Mosaic lowering issues here
    except Exception:
        # Fallback: previously-validated layout with (W, 2*Co) trailing block
        # dims (slower masked stores, identical math / identical memory order).
        out = run(dense_store=False)

    # Memory order of `out` is (b, s, ks, h, kh, w, kw, co) in both layouts,
    # i.e. exactly the flattened ConvTranspose3d output -> free reshape.
    return out.reshape(B, 8 * L, Co)


def _reference(x, S, H, W, gamma, beta, weight, bias):
    """Pure-JAX reference matching the PyTorch module."""
    B, L, C = x.shape
    Co = C // 2
    xr = x.reshape(B, S, H, W, C).astype(jnp.float32)
    mean = xr.mean(-1, keepdims=True)
    var = jnp.mean(jnp.square(xr - mean), -1, keepdims=True)
    xn = (xr - mean) / jnp.sqrt(var + LN_EPS) * gamma + beta
    # ConvTranspose3d(k=2, s=2): out[b, 2s+ks, 2h+kh, 2w+kw, co] =
    #   sum_c xn[b,s,h,w,c] * W[c,co,ks,kh,kw] + bias[co]
    y = jnp.einsum('bshwc,cokij->bskhiwjo', xn, weight) + bias
    return y.reshape(B, (2 * S) * (2 * H) * (2 * W), Co)


def _run_case(key, *, B, S, H, W, dim, compute_dtype=None,
              atol=1e-4, rtol=1e-4):
    k1, k2, k3, k4, k5 = jax.random.split(key, 5)
    L = S * H * W
    Co = dim // 2
    x = jax.random.normal(k1, (B, L, dim), dtype=jnp.float32)
    gamma = 1.0 + 0.1 * jax.random.normal(k2, (dim,), dtype=jnp.float32)
    beta = 0.1 * jax.random.normal(k3, (dim,), dtype=jnp.float32)
    weight = 0.1 * jax.random.normal(k4, (dim, Co, 2, 2, 2), dtype=jnp.float32)
    bias = 0.1 * jax.random.normal(k5, (Co,), dtype=jnp.float32)

    out = patch_expanding(x, S, H, W, gamma, beta, weight, bias,
                          compute_dtype=compute_dtype)
    out = jax.block_until_ready(out)

    ref = _reference(x, S, H, W, gamma, beta, weight, bias)
    assert out.shape == (B, 8 * L, Co), out.shape
    err = float(jnp.max(jnp.abs(out - ref)))
    assert jnp.allclose(out, ref, atol=atol, rtol=rtol), err
    return err


if __name__ == "__main__":
    key = jax.random.PRNGKey(0)
    k0, k1, k2, k3 = jax.random.split(key, 4)

    # 1) base stage: 2*Co < 128 -> four narrow matmuls, f32 compute.
    _run_case(k0, B=2, S=2, H=4, W=4, dim=32)
    # 2) lane-aligned stage: 2*Co == 128 -> single fused (C, 8*Co) matmul.
    _run_case(k1, B=1, S=2, H=4, W=4, dim=128)
    # 3) multi-slab blocks (ts > 1) over a larger batch*depth.
    _run_case(k2, B=2, S=8, H=4, W=4, dim=32)
    # 4) bf16 MXU compute path (f32 accumulation) -> looser tolerance.
    _run_case(k3, B=2, S=2, H=4, W=4, dim=64, compute_dtype=jnp.bfloat16,
              atol=5e-2, rtol=5e-2)

    print("KERNEL_OK")
</pallas_src>

<mosaic_0001>
module attributes {stable_mosaic.version = 11 : i64} {
  func.func @_patch_expand_kernel(%arg0: i32, %arg1: i32, %arg2: memref<1x16x32xf32, #tpu.memory_space<vmem>>, %arg3: memref<4x32x32xf32, #tpu.memory_space<vmem>>, %arg4: memref<4x1x32xf32, #tpu.memory_space<vmem>>, %arg5: memref<1x2x4x256xf32, #tpu.memory_space<vmem>>) attributes {dimension_semantics = [#tpu.dimension_semantics<parallel>, #tpu.dimension_semantics<parallel>], iteration_bounds = array<i64: 4, 1>, scalar_prefetch = 0 : i64, scratch_operands = 0 : i64, tpu.core_type = #tpu.core_type<tc>, window_params = [{transform_indices = @transform_0, window_bounds = array<i64: 1, 16, 32>}, {pipeline_mode = #tpu.pipeline_mode<synchronous>, transform_indices = @transform_1, window_bounds = array<i64: 4, 32, 32>}, {pipeline_mode = #tpu.pipeline_mode<synchronous>, transform_indices = @transform_2, window_bounds = array<i64: 4, 1, 32>}, {transform_indices = @transform_3, window_bounds = array<i64: 1, 2, 4, 256>}]} {
    %c0 = arith.constant 0 : index
    %c0_0 = arith.constant 0 : index
    %c0_1 = arith.constant 0 : index
    %0 = vector.load %arg2[%c0, %c0_0, %c0_1] : memref<1x16x32xf32, #tpu.memory_space<vmem>>, vector<1x16x32xf32>
    %1 = vector.shape_cast %0 : vector<1x16x32xf32> to vector<16x32xf32>
    %cst = arith.constant dense<0.000000e+00> : vector<16xf32>
    %2 = vector.multi_reduction <add>, %1, %cst [1] : vector<16x32xf32> to vector<16xf32>
    %3 = vector.shape_cast %2 : vector<16xf32> to vector<16x1xf32>
    %cst_2 = arith.constant 3.200000e+01 : f32
    %4 = vector.broadcast %cst_2 : f32 to vector<16x1xf32>
    %5 = arith.divf %3, %4 : vector<16x1xf32>
    %6 = vector.broadcast %5 : vector<16x1xf32> to vector<16x32xf32>
    %7 = arith.subf %1, %6 : vector<16x32xf32>
    %8 = arith.mulf %7, %7 : vector<16x32xf32>
    %cst_3 = arith.constant dense<0.000000e+00> : vector<16xf32>
    %9 = vector.multi_reduction <add>, %8, %cst_3 [1] : vector<16x32xf32> to vector<16xf32>
    %10 = vector.shape_cast %9 : vector<16xf32> to vector<16x1xf32>
    %cst_4 = arith.constant 3.200000e+01 : f32
    %11 = vector.broadcast %cst_4 : f32 to vector<16x1xf32>
    %12 = arith.divf %10, %11 : vector<16x1xf32>
    %cst_5 = arith.constant 9.99999974E-6 : f32
    %13 = vector.broadcast %cst_5 : f32 to vector<16x1xf32>
    %14 = arith.addf %12, %13 : vector<16x1xf32>
    %15 = math.rsqrt %14 : vector<16x1xf32>
    %16 = vector.broadcast %15 : vector<16x1xf32> to vector<16x32xf32>
    %17 = arith.mulf %7, %16 : vector<16x32xf32>
    %c0_6 = arith.constant 0 : index
    %c0_7 = arith.constant 0 : index
    %c0_8 = arith.constant 0 : index
    %18 = vector.load %arg3[%c0_6, %c0_7, %c0_8] : memref<4x32x32xf32, #tpu.memory_space<vmem>>, vector<1x32x32xf32>
    %19 = vector.shape_cast %18 : vector<1x32x32xf32> to vector<32x32xf32>
    %cst_9 = arith.constant dense<0.000000e+00> : vector<16x32xf32>
    %20 = tpu.matmul %17, %19, %cst_9 {dimension_numbers = #tpu.dot_dimension_numbers<[1], [0], [0], [1], [0, 0, 1, 1], [], []>} : vector<16x32xf32>, vector<32x32xf32>, vector<16x32xf32> -> vector<16x32xf32>
    %c0_10 = arith.constant 0 : index
    %c0_11 = arith.constant 0 : index
    %c0_12 = arith.constant 0 : index
    %21 = vector.load %arg4[%c0_10, %c0_11, %c0_12] : memref<4x1x32xf32, #tpu.memory_space<vmem>>, vector<1x1x32xf32>
    %22 = vector.shape_cast %21 : vector<1x1x32xf32> to vector<1x32xf32>
    %23 = vector.broadcast %22 : vector<1x32xf32> to vector<16x32xf32>
    %24 = arith.addf %20, %23 : vector<16x32xf32>
    %25 = vector.shape_cast %24 : vector<16x32xf32> to vector<1x4x128xf32>
    %c0_13 = arith.constant 0 : index
    %c0_14 = arith.constant 0 : index
    %c0_15 = arith.constant 0 : index
    %c0_16 = arith.constant 0 : index
    %26 = vector.load %arg5[%c0_13, %c0_14, %c0_15, %c0_16] : memref<1x2x4x256xf32, #tpu.memory_space<vmem>>, vector<1x1x4x128xf32>
    %27 = vector.shape_cast %26 : vector<1x1x4x128xf32> to vector<1x4x128xf32>
    %28 = vector.shape_cast %25 : vector<1x4x128xf32> to vector<1x1x4x128xf32>
    tpu.vector_store %arg5[%c0_13, %c0_14, %c0_15, %c0_16], %28 {strides = array<i32>} : memref<1x2x4x256xf32, #tpu.memory_space<vmem>>, vector<1x1x4x128xf32>,
    %c1 = arith.constant 1 : index
    %c0_17 = arith.constant 0 : index
    %c0_18 = arith.constant 0 : index
    %29 = vector.load %arg3[%c1, %c0_17, %c0_18] : memref<4x32x32xf32, #tpu.memory_space<vmem>>, vector<1x32x32xf32>
    %30 = vector.shape_cast %29 : vector<1x32x32xf32> to vector<32x32xf32>
    %cst_19 = arith.constant dense<0.000000e+00> : vector<16x32xf32>
    %31 = tpu.matmul %17, %30, %cst_19 {dimension_numbers = #tpu.dot_dimension_numbers<[1], [0], [0], [1], [0, 0, 1, 1], [], []>} : vector<16x32xf32>, vector<32x32xf32>, vector<16x32xf32> -> vector<16x32xf32>
    %c1_20 = arith.constant 1 : index
    %c0_21 = arith.constant 0 : index
    %c0_22 = arith.constant 0 : index
    %32 = vector.load %arg4[%c1_20, %c0_21, %c0_22] : memref<4x1x32xf32, #tpu.memory_space<vmem>>, vector<1x1x32xf32>
    %33 = vector.shape_cast %32 : vector<1x1x32xf32> to vector<1x32xf32>
    %34 = vector.broadcast %33 : vector<1x32xf32> to vector<16x32xf32>
    %35 = arith.addf %31, %34 : vector<16x32xf32>
    %36 = vector.shape_cast %35 : vector<16x32xf32> to vector<1x4x128xf32>
    %c0_23 = arith.constant 0 : index
    %c0_24 = arith.constant 0 : index
    %c0_25 = arith.constant 0 : index
    %c128 = arith.constant 128 : index
    %37 = vector.load %arg5[%c0_23, %c0_24, %c0_25, %c128] : memref<1x2x4x256xf32, #tpu.memory_space<vmem>>, vector<1x1x4x128xf32>
    %38 = vector.shape_cast %37 : vector<1x1x4x128xf32> to vector<1x4x128xf32>
    %39 = vector.shape_cast %36 : vector<1x4x128xf32> to vector<1x1x4x128xf32>
    tpu.vector_store %arg5[%c0_23, %c0_24, %c0_25, %c128], %39 {strides = array<i32>} : memref<1x2x4x256xf32, #tpu.memory_space<vmem>>, vector<1x1x4x128xf32>,
    %c2 = arith.constant 2 : index
    %c0_26 = arith.constant 0 : index
    %c0_27 = arith.constant 0 : index
    %40 = vector.load %arg3[%c2, %c0_26, %c0_27] : memref<4x32x32xf32, #tpu.memory_space<vmem>>, vector<1x32x32xf32>
    %41 = vector.shape_cast %40 : vector<1x32x32xf32> to vector<32x32xf32>
    %cst_28 = arith.constant dense<0.000000e+00> : vector<16x32xf32>
    %42 = tpu.matmul %17, %41, %cst_28 {dimension_numbers = #tpu.dot_dimension_numbers<[1], [0], [0], [1], [0, 0, 1, 1], [], []>} : vector<16x32xf32>, vector<32x32xf32>, vector<16x32xf32> -> vector<16x32xf32>
    %c2_29 = arith.constant 2 : index
    %c0_30 = arith.constant 0 : index
    %c0_31 = arith.constant 0 : index
    %43 = vector.load %arg4[%c2_29, %c0_30, %c0_31] : memref<4x1x32xf32, #tpu.memory_space<vmem>>, vector<1x1x32xf32>
    %44 = vector.shape_cast %43 : vector<1x1x32xf32> to vector<1x32xf32>
    %45 = vector.broadcast %44 : vector<1x32xf32> to vector<16x32xf32>
    %46 = arith.addf %42, %45 : vector<16x32xf32>
    %47 = vector.shape_cast %46 : vector<16x32xf32> to vector<1x4x128xf32>
    %c0_32 = arith.constant 0 : index
    %c1_33 = arith.constant 1 : index
    %c0_34 = arith.constant 0 : index
    %c0_35 = arith.constant 0 : index
    %48 = vector.load %arg5[%c0_32, %c1_33, %c0_34, %c0_35] : memref<1x2x4x256xf32, #tpu.memory_space<vmem>>, vector<1x1x4x128xf32>
    %49 = vector.shape_cast %48 : vector<1x1x4x128xf32> to vector<1x4x128xf32>
    %50 = vector.shape_cast %47 : vector<1x4x128xf32> to vector<1x1x4x128xf32>
    tpu.vector_store %arg5[%c0_32, %c1_33, %c0_34, %c0_35], %50 {strides = array<i32>} : memref<1x2x4x256xf32, #tpu.memory_space<vmem>>, vector<1x1x4x128xf32>,
    %c3 = arith.constant 3 : index
    %c0_36 = arith.constant 0 : index
    %c0_37 = arith.constant 0 : index
    %51 = vector.load %arg3[%c3, %c0_36, %c0_37] : memref<4x32x32xf32, #tpu.memory_space<vmem>>, vector<1x32x32xf32>
    %52 = vector.shape_cast %51 : vector<1x32x32xf32> to vector<32x32xf32>
    %cst_38 = arith.constant dense<0.000000e+00> : vector<16x32xf32>
    %53 = tpu.matmul %17, %52, %cst_38 {dimension_numbers = #tpu.dot_dimension_numbers<[1], [0], [0], [1], [0, 0, 1, 1], [], []>} : vector<16x32xf32>, vector<32x32xf32>, vector<16x32xf32> -> vector<16x32xf32>
    %c3_39 = arith.constant 3 : index
    %c0_40 = arith.constant 0 : index
    %c0_41 = arith.constant 0 : index
    %54 = vector.load %arg4[%c3_39, %c0_40, %c0_41] : memref<4x1x32xf32, #tpu.memory_space<vmem>>, vector<1x1x32xf32>
    %55 = vector.shape_cast %54 : vector<1x1x32xf32> to vector<1x32xf32>
    %56 = vector.broadcast %55 : vector<1x32xf32> to vector<16x32xf32>
    %57 = arith.addf %53, %56 : vector<16x32xf32>
    %58 = vector.shape_cast %57 : vector<16x32xf32> to vector<1x4x128xf32>
    %c0_42 = arith.constant 0 : index
    %c1_43 = arith.constant 1 : index
    %c0_44 = arith.constant 0 : index
    %c128_45 = arith.constant 128 : index
    %59 = vector.load %arg5[%c0_42, %c1_43, %c0_44, %c128_45] : memref<1x2x4x256xf32, #tpu.memory_space<vmem>>, vector<1x1x4x128xf32>
    %60 = vector.shape_cast %59 : vector<1x1x4x128xf32> to vector<1x4x128xf32>
    %61 = vector.shape_cast %58 : vector<1x4x128xf32> to vector<1x1x4x128xf32>
    tpu.vector_store %arg5[%c0_42, %c1_43, %c0_44, %c128_45], %61 {strides = array<i32>} : memref<1x2x4x256xf32, #tpu.memory_space<vmem>>, vector<1x1x4x128xf32>,
    return
  }
  func.func @transform_0(%arg0: i32, %arg1: i32) -> (i32, i32, i32) {
    %c0_i32 = arith.constant 0 : i32
    %c0_i32_0 = arith.constant 0 : i32
    return %arg0, %arg1, %c0_i32 : i32, i32, i32
  }
  func.func @transform_1(%arg0: i32, %arg1: i32) -> (i32, i32, i32) {
    %c0_i32 = arith.constant 0 : i32
    %c0_i32_0 = arith.constant 0 : i32
    %c0_i32_1 = arith.constant 0 : i32
    %c0_i32_2 = arith.constant 0 : i32
    return %c0_i32, %c0_i32_0, %c0_i32_1 : i32, i32, i32
  }
  func.func @transform_2(%arg0: i32, %arg1: i32) -> (i32, i32, i32) {
    %c0_i32 = arith.constant 0 : i32
    %c0_i32_0 = arith.constant 0 : i32
    %c0_i32_1 = arith.constant 0 : i32
    %c0_i32_2 = arith.constant 0 : i32
    return %c0_i32, %c0_i32_0, %c0_i32_1 : i32, i32, i32
  }
  func.func @transform_3(%arg0: i32, %arg1: i32) -> (i32, i32, i32, i32) {
    %c0_i32 = arith.constant 0 : i32
    %c0_i32_0 = arith.constant 0 : i32
    %c0_i32_1 = arith.constant 0 : i32
    return %arg0, %c0_i32, %arg1, %c0_i32_0 : i32, i32, i32, i32
  }
}

module attributes {stable_mosaic.version = 11 : i64} {
  func.func @_patch_expand_kernel(%arg0: i32, %arg1: i32, %arg2: memref<1x16x32xf32, #tpu.memory_space<vmem>>, %arg3: memref<4x32x32xf32, #tpu.memory_space<vmem>>, %arg4: memref<4x1x32xf32, #tpu.memory_space<vmem>>, %arg5: memref<1x2x4x2x4x32xf32, #tpu.memory_space<vmem>>) attributes {dimension_semantics = [#tpu.dimension_semantics<parallel>, #tpu.dimension_semantics<parallel>], iteration_bounds = array<i64: 4, 1>, scalar_prefetch = 0 : i64, scratch_operands = 0 : i64, tpu.core_type = #tpu.core_type<tc>, window_params = [{transform_indices = @transform_0, window_bounds = array<i64: 1, 16, 32>}, {pipeline_mode = #tpu.pipeline_mode<synchronous>, transform_indices = @transform_1, window_bounds = array<i64: 4, 32, 32>}, {pipeline_mode = #tpu.pipeline_mode<synchronous>, transform_indices = @transform_2, window_bounds = array<i64: 4, 1, 32>}, {transform_indices = @transform_3, window_bounds = array<i64: 1, 2, 4, 2, 4, 32>}]} {
    %c0 = arith.constant 0 : index
    %c0_0 = arith.constant 0 : index
    %c0_1 = arith.constant 0 : index
    %0 = vector.load %arg2[%c0, %c0_0, %c0_1] : memref<1x16x32xf32, #tpu.memory_space<vmem>>, vector<1x16x32xf32>
    %1 = vector.shape_cast %0 : vector<1x16x32xf32> to vector<16x32xf32>
    %cst = arith.constant dense<0.000000e+00> : vector<16xf32>
    %2 = vector.multi_reduction <add>, %1, %cst [1] : vector<16x32xf32> to vector<16xf32>
    %3 = vector.shape_cast %2 : vector<16xf32> to vector<16x1xf32>
    %cst_2 = arith.constant 3.200000e+01 : f32
    %4 = vector.broadcast %cst_2 : f32 to vector<16x1xf32>
    %5 = arith.divf %3, %4 : vector<16x1xf32>
    %6 = vector.broadcast %5 : vector<16x1xf32> to vector<16x32xf32>
    %7 = arith.subf %1, %6 : vector<16x32xf32>
    %8 = arith.mulf %7, %7 : vector<16x32xf32>
    %cst_3 = arith.constant dense<0.000000e+00> : vector<16xf32>
    %9 = vector.multi_reduction <add>, %8, %cst_3 [1] : vector<16x32xf32> to vector<16xf32>
    %10 = vector.shape_cast %9 : vector<16xf32> to vector<16x1xf32>
    %cst_4 = arith.constant 3.200000e+01 : f32
    %11 = vector.broadcast %cst_4 : f32 to vector<16x1xf32>
    %12 = arith.divf %10, %11 : vector<16x1xf32>
    %cst_5 = arith.constant 9.99999974E-6 : f32
    %13 = vector.broadcast %cst_5 : f32 to vector<16x1xf32>
    %14 = arith.addf %12, %13 : vector<16x1xf32>
    %15 = math.rsqrt %14 : vector<16x1xf32>
    %16 = vector.broadcast %15 : vector<16x1xf32> to vector<16x32xf32>
    %17 = arith.mulf %7, %16 : vector<16x32xf32>
    %c0_6 = arith.constant 0 : index
    %c0_7 = arith.constant 0 : index
    %c0_8 = arith.constant 0 : index
    %18 = vector.load %arg3[%c0_6, %c0_7, %c0_8] : memref<4x32x32xf32, #tpu.memory_space<vmem>>, vector<1x32x32xf32>
    %19 = vector.shape_cast %18 : vector<1x32x32xf32> to vector<32x32xf32>
    %cst_9 = arith.constant dense<0.000000e+00> : vector<16x32xf32>
    %20 = tpu.matmul %17, %19, %cst_9 {dimension_numbers = #tpu.dot_dimension_numbers<[1], [0], [0], [1], [0, 0, 1, 1], [], []>} : vector<16x32xf32>, vector<32x32xf32>, vector<16x32xf32> -> vector<16x32xf32>
    %c0_10 = arith.constant 0 : index
    %c0_11 = arith.constant 0 : index
    %c0_12 = arith.constant 0 : index
    %21 = vector.load %arg4[%c0_10, %c0_11, %c0_12] : memref<4x1x32xf32, #tpu.memory_space<vmem>>, vector<1x1x32xf32>
    %22 = vector.shape_cast %21 : vector<1x1x32xf32> to vector<1x32xf32>
    %23 = vector.broadcast %22 : vector<1x32xf32> to vector<16x32xf32>
    %24 = arith.addf %20, %23 : vector<16x32xf32>
    %25 = vector.shape_cast %24 : vector<16x32xf32> to vector<1x4x4x32xf32>
    %c0_13 = arith.constant 0 : index
    %c0_14 = arith.constant 0 : index
    %c0_15 = arith.constant 0 : index
    %c0_16 = arith.constant 0 : index
    %c0_17 = arith.constant 0 : index
    %c0_18 = arith.constant 0 : index
    %26 = vector.load %arg5[%c0_13, %c0_14, %c0_15, %c0_16, %c0_17, %c0_18] : memref<1x2x4x2x4x32xf32, #tpu.memory_space<vmem>>, vector<1x1x4x1x4x32xf32>
    %27 = vector.shape_cast %26 : vector<1x1x4x1x4x32xf32> to vector<1x4x4x32xf32>
    %28 = vector.shape_cast %25 : vector<1x4x4x32xf32> to vector<1x1x4x1x4x32xf32>
    tpu.vector_store %arg5[%c0_13, %c0_14, %c0_15, %c0_16, %c0_17, %c0_18], %28 {strides = array<i32>} : memref<1x2x4x2x4x32xf32, #tpu.memory_space<vmem>>, vector<1x1x4x1x4x32xf32>,
    %c1 = arith.constant 1 : index
    %c0_19 = arith.constant 0 : index
    %c0_20 = arith.constant 0 : index
    %29 = vector.load %arg3[%c1, %c0_19, %c0_20] : memref<4x32x32xf32, #tpu.memory_space<vmem>>, vector<1x32x32xf32>
    %30 = vector.shape_cast %29 : vector<1x32x32xf32> to vector<32x32xf32>
    %cst_21 = arith.constant dense<0.000000e+00> : vector<16x32xf32>
    %31 = tpu.matmul %17, %30, %cst_21 {dimension_numbers = #tpu.dot_dimension_numbers<[1], [0], [0], [1], [0, 0, 1, 1], [], []>} : vector<16x32xf32>, vector<32x32xf32>, vector<16x32xf32> -> vector<16x32xf32>
    %c1_22 = arith.constant 1 : index
    %c0_23 = arith.constant 0 : index
    %c0_24 = arith.constant 0 : index
    %32 = vector.load %arg4[%c1_22, %c0_23, %c0_24] : memref<4x1x32xf32, #tpu.memory_space<vmem>>, vector<1x1x32xf32>
    %33 = vector.shape_cast %32 : vector<1x1x32xf32> to vector<1x32xf32>
    %34 = vector.broadcast %33 : vector<1x32xf32> to vector<16x32xf32>
    %35 = arith.addf %31, %34 : vector<16x32xf32>
    %36 = vector.shape_cast %35 : vector<16x32xf32> to vector<1x4x4x32xf32>
    %c0_25 = arith.constant 0 : index
    %c0_26 = arith.constant 0 : index
    %c0_27 = arith.constant 0 : index
    %c1_28 = arith.constant 1 : index
    %c0_29 = arith.constant 0 : index
    %c0_30 = arith.constant 0 : index
    %37 = vector.load %arg5[%c0_25, %c0_26, %c0_27, %c1_28, %c0_29, %c0_30] : memref<1x2x4x2x4x32xf32, #tpu.memory_space<vmem>>, vector<1x1x4x1x4x32xf32>
    %38 = vector.shape_cast %37 : vector<1x1x4x1x4x32xf32> to vector<1x4x4x32xf32>
    %39 = vector.shape_cast %36 : vector<1x4x4x32xf32> to vector<1x1x4x1x4x32xf32>
    tpu.vector_store %arg5[%c0_25, %c0_26, %c0_27, %c1_28, %c0_29, %c0_30], %39 {strides = array<i32>} : memref<1x2x4x2x4x32xf32, #tpu.memory_space<vmem>>, vector<1x1x4x1x4x32xf32>,
    %c2 = arith.constant 2 : index
    %c0_31 = arith.constant 0 : index
    %c0_32 = arith.constant 0 : index
    %40 = vector.load %arg3[%c2, %c0_31, %c0_32] : memref<4x32x32xf32, #tpu.memory_space<vmem>>, vector<1x32x32xf32>
    %41 = vector.shape_cast %40 : vector<1x32x32xf32> to vector<32x32xf32>
    %cst_33 = arith.constant dense<0.000000e+00> : vector<16x32xf32>
    %42 = tpu.matmul %17, %41, %cst_33 {dimension_numbers = #tpu.dot_dimension_numbers<[1], [0], [0], [1], [0, 0, 1, 1], [], []>} : vector<16x32xf32>, vector<32x32xf32>, vector<16x32xf32> -> vector<16x32xf32>
    %c2_34 = arith.constant 2 : index
    %c0_35 = arith.constant 0 : index
    %c0_36 = arith.constant 0 : index
    %43 = vector.load %arg4[%c2_34, %c0_35, %c0_36] : memref<4x1x32xf32, #tpu.memory_space<vmem>>, vector<1x1x32xf32>
    %44 = vector.shape_cast %43 : vector<1x1x32xf32> to vector<1x32xf32>
    %45 = vector.broadcast %44 : vector<1x32xf32> to vector<16x32xf32>
    %46 = arith.addf %42, %45 : vector<16x32xf32>
    %47 = vector.shape_cast %46 : vector<16x32xf32> to vector<1x4x4x32xf32>
    %c0_37 = arith.constant 0 : index
    %c1_38 = arith.constant 1 : index
    %c0_39 = arith.constant 0 : index
    %c0_40 = arith.constant 0 : index
    %c0_41 = arith.constant 0 : index
    %c0_42 = arith.constant 0 : index
    %48 = vector.load %arg5[%c0_37, %c1_38, %c0_39, %c0_40, %c0_41, %c0_42] : memref<1x2x4x2x4x32xf32, #tpu.memory_space<vmem>>, vector<1x1x4x1x4x32xf32>
    %49 = vector.shape_cast %48 : vector<1x1x4x1x4x32xf32> to vector<1x4x4x32xf32>
    %50 = vector.shape_cast %47 : vector<1x4x4x32xf32> to vector<1x1x4x1x4x32xf32>
    tpu.vector_store %arg5[%c0_37, %c1_38, %c0_39, %c0_40, %c0_41, %c0_42], %50 {strides = array<i32>} : memref<1x2x4x2x4x32xf32, #tpu.memory_space<vmem>>, vector<1x1x4x1x4x32xf32>,
    %c3 = arith.constant 3 : index
    %c0_43 = arith.constant 0 : index
    %c0_44 = arith.constant 0 : index
    %51 = vector.load %arg3[%c3, %c0_43, %c0_44] : memref<4x32x32xf32, #tpu.memory_space<vmem>>, vector<1x32x32xf32>
    %52 = vector.shape_cast %51 : vector<1x32x32xf32> to vector<32x32xf32>
    %cst_45 = arith.constant dense<0.000000e+00> : vector<16x32xf32>
    %53 = tpu.matmul %17, %52, %cst_45 {dimension_numbers = #tpu.dot_dimension_numbers<[1], [0], [0], [1], [0, 0, 1, 1], [], []>} : vector<16x32xf32>, vector<32x32xf32>, vector<16x32xf32> -> vector<16x32xf32>
    %c3_46 = arith.constant 3 : index
    %c0_47 = arith.constant 0 : index
    %c0_48 = arith.constant 0 : index
    %54 = vector.load %arg4[%c3_46, %c0_47, %c0_48] : memref<4x1x32xf32, #tpu.memory_space<vmem>>, vector<1x1x32xf32>
    %55 = vector.shape_cast %54 : vector<1x1x32xf32> to vector<1x32xf32>
    %56 = vector.broadcast %55 : vector<1x32xf32> to vector<16x32xf32>
    %57 = arith.addf %53, %56 : vector<16x32xf32>
    %58 = vector.shape_cast %57 : vector<16x32xf32> to vector<1x4x4x32xf32>
    %c0_49 = arith.constant 0 : index
    %c1_50 = arith.constant 1 : index
    %c0_51 = arith.constant 0 : index
    %c1_52 = arith.constant 1 : index
    %c0_53 = arith.constant 0 : index
    %c0_54 = arith.constant 0 : index
    %59 = vector.load %arg5[%c0_49, %c1_50, %c0_51, %c1_52, %c0_53, %c0_54] : memref<1x2x4x2x4x32xf32, #tpu.memory_space<vmem>>, vector<1x1x4x1x4x32xf32>
    %60 = vector.shape_cast %59 : vector<1x1x4x1x4x32xf32> to vector<1x4x4x32xf32>
    %61 = vector.shape_cast %58 : vector<1x4x4x32xf32> to vector<1x1x4x1x4x32xf32>
    tpu.vector_store %arg5[%c0_49, %c1_50, %c0_51, %c1_52, %c0_53, %c0_54], %61 {strides = array<i32>} : memref<1x2x4x2x4x32xf32, #tpu.memory_space<vmem>>, vector<1x1x4x1x4x32xf32>,
    return
  }
  func.func @transform_0(%arg0: i32, %arg1: i32) -> (i32, i32, i32) {
    %c0_i32 = arith.constant 0 : i32
    %c0_i32_0 = arith.constant 0 : i32
    return %arg0, %arg1, %c0_i32 : i32, i32, i32
  }
  func.func @transform_1(%arg0: i32, %arg1: i32) -> (i32, i32, i32) {
    %c0_i32 = arith.constant 0 : i32
    %c0_i32_0 = arith.constant 0 : i32
    %c0_i32_1 = arith.constant 0 : i32
    %c0_i32_2 = arith.constant 0 : i32
    return %c0_i32, %c0_i32_0, %c0_i32_1 : i32, i32, i32
  }
  func.func @transform_2(%arg0: i32, %arg1: i32) -> (i32, i32, i32) {
    %c0_i32 = arith.constant 0 : i32
    %c0_i32_0 = arith.constant 0 : i32
    %c0_i32_1 = arith.constant 0 : i32
    %c0_i32_2 = arith.constant 0 : i32
    return %c0_i32, %c0_i32_0, %c0_i32_1 : i32, i32, i32
  }
  func.func @transform_3(%arg0: i32, %arg1: i32) -> (i32, i32, i32, i32, i32, i32) {
    %c0_i32 = arith.constant 0 : i32
    %c0_i32_0 = arith.constant 0 : i32
    %c0_i32_1 = arith.constant 0 : i32
    %c0_i32_2 = arith.constant 0 : i32
    %c0_i32_3 = arith.constant 0 : i32
    return %arg0, %c0_i32, %arg1, %c0_i32_0, %c0_i32_1, %c0_i32_2 : i32, i32, i32, i32, i32, i32
  }
}

</mosaic_0001>

<bundles_post_ra>
// kernel: tpu_custom_call.1
= control target key start
LH: loop header
LB: loop body
LE: loop exit
PB: predicated region body
PF: predicated region fallthrough
CT: control target
= control target key end

     0   :  { %8 = vsyncpa [#allocation3], 0  ;;  %s1159_s0 = inlined_call_operand.hbm [shape: f32[4,16,32], index: 0, kind: input, shape index: {}]   ;;  %s1160_s1 = inlined_call_operand.hbm [shape: f32[4,32,32], index: 1, kind: input, shape index: {}]   ;;  %s1161_s2 = inlined_call_operand.hbm [shape: f32[4,1,32], index: 2, kind: input, shape index: {}]   ;;  %s1162_s3 = inlined_call_operand.hbm [shape: f32[4,2,4,2,4,32], index: 3, kind: output, shape index: {}]  }
   0x1   :  { %10 = vsyncpa [#allocation3 + $0x1], 0 }
   0x2   :  { %11 = vsyncpa [#allocation6], 0 }
   0x3   :  { %12 = vsyncpa [#allocation4], 0 }
   0x4   :  { %14 = vsyncpa [#allocation4 + $0x1], 0  ;;  %s951_s12 = smov 0   ;;  %s953_s13 = smov 0  }
   0x5   :  { %s955_s14 = smov 0   ;;  %s957_s15 = smov 0  }
   0x6   :  { %s959_s16 = smov 0   ;;  %s961_s17 = smov 0  }
   0x7 LB: > { %s603_s18 = sadd.s32 4294967295, %s920_s17   ;;  %s604_s19 = sadd.s32 4294967294, %s920_s17   ;;  %s920_s17 = sphi %s961_s17, %s20_s17   ;;  %s916_s16 = sphi %s959_s16, %s1172_s16   ;;  %s912_s15 = sphi %s957_s15, %s1171_s15   ;;  %s908_s14 = sphi %s955_s14, %s1170_s14   ;;  %s904_s13 = sphi %s953_s13, %s1169_s13   ;;  %s900_s12 = sphi %s951_s12, %s1168_s12  }
   0x8   : > { %p54_p0 = scmp.ne.s32.totalorder %s904_s13, %s900_s12  ;;  %p987_p1 = scmp.eq.s32.totalorder %s603_s18, 0 }
   0x9   : > { %p128_p2 = scmp.eq.s32.totalorder %s604_s19, 3  ;;  %p605_p4 = scmp.ge.s32.totalorder %s920_s17, 1 }
   0xa   : > { %p993_p3 = por %p987_p1, %p54_p0  ;;  %p135_p6 = scmp.lt.s32.totalorder %s920_s17, 5 }
   0xb   : > { %p998_p5 = por %p128_p2, %p54_p0  ;;  %s146_s25 = sshll.u32 %s1160_s1, 4  ;;  %s147_s25 = int_to_ptr.hbm [resolvable:$true] %s146_s25 }
   0xc   : > { %p1006_p7 = pnand %p605_p4, %p135_p6  ;;  %s922_s27 = smov [#allocation5]  }
   0xd   : > { %s148_s28 = sshll.u32 %s922_s27, 4  ;;  %s160_s4 = sshll.u32 %s1161_s2, 4  ;;  %s149_s28 = int_to_ptr.vmem [resolvable:$true] %s148_s28  ;;  %s161_s4 = int_to_ptr.hbm [resolvable:$true] %s160_s4 }
   0xe   : > { %p656_p8 = pneg %p1006_p7  ;;  %s923_s5 = smov 128  }
   0xf   : > { %s924_s6 = smov 8   ;;  %s925_s7 = smov [#allocation7]  }
  0x10   : > { %p657_p9 = pnand %p656_p8, %p987_p1  ;;  %s162_s8 = sshll.u32 %s925_s7, 4  ;;  %s163_s8 = int_to_ptr.vmem [resolvable:$true] %s162_s8 }
  0x11   : > { %s926_s9 = smov 16   ;;  %s927_s10 = smov 1  }
  0x12   : > { %659 = dma.hbm_to_vmem [thread:$0]  (!%p657_p9), %s147_s25, 2048, %s149_s28, [#allocation6], %s923_s5, %s923_s5, %s924_s6  }
  0x13   : > { %662 = dma.hbm_to_vmem [thread:$0]  (!%p657_p9), %s161_s4, 64, %s163_s8, [#allocation6], %s926_s9, %s926_s9, %s927_s10  }
  0x14   : > { %p122_p10 = scmp.eq.s32.totalorder %s603_s18, 3  ;;  %s32_s11 = sadd.s32 1, %s916_s16 }
  0x15   : > { %p34_p11 = scmp.ge.s32.totalorder %s32_s11, 4  ;;  %s41_s19 = sadd.s32 1, %s908_s14 }
  0x16   : > { %p48_p12 = scmp.ne.s32.totalorder %s908_s14, %s904_s13  ;;  %p49_p13 = scmp.eq.s32.totalorder %s920_s17, 0 }
  0x17   : > { %s1174_s11 = smov (%p34_p11, %s32_s11), 0  ;;  %p673_p2 = scmp.lt.s32.totalorder %s920_s17, 4 }
  0x18   : > { %p1029_p0 = por %p122_p10, %p48_p12  ;;  %s36_s24 = ssub.s32 %s916_s16, %s1174_s11 }
  0x19   : > { %s176_s25 = sand.u32 1, %s908_s14   ;;  %p39_p4 = scmp.eq.s32.totalorder %s36_s24, 0 }
  0x1a   : > { %p50_p6 = por %p49_p13, %p48_p12  ;;  %s609_s27 = sshll.u32 %s176_s25, 4 }
  0x1b   : > { %s642_s18 = sshll.u32 %s916_s16, 4  ;;  %s180_s8 = scalar_lea.vmem [#allocation2], %s609_s27 }
  0x1c   : > { %s1039_s28 = scalar_select %p39_p4, %s908_s14, %s41_s19  }
  0x1d   : > { %s187_s4 = scalar_lea.hbm %s1159_s0, %s642_s18  ;;  %s190_s9 = sshll.u32 %s180_s8, 4  ;;  %s191_s9 = int_to_ptr.vmem [resolvable:$true] %s190_s9 }
  0x1e   : > { %s188_s7 = sshll.u32 %s187_s4, 4  ;;  %p664_p8 = pnand %p673_p2, %p50_p6  ;;  %s189_s7 = int_to_ptr.hbm [resolvable:$true] %s188_s7 }
  0x1f   : > { %s177_s10 = scalar_lea.sflag [#allocation3], %s176_s25  ;;  %202 = sbr.rel (%p1006_p7) target bundleno = 454 (0x1c6), region = 32 }
  0x20   : > { %666 = dma.hbm_to_vmem [thread:$0]  (!%p664_p8), %s189_s7, 256, %s191_s9, %s177_s10, %s923_s5, %s923_s5, %s924_s6  }
  0x21   : > { %s1052_s19 = sand.u32 (!%p1006_p7), 1, %s904_s13  }
  0x22   : > { %s613_s24 = sshll.u32 (!%p1006_p7), %s1052_s19, 4  ;;  %s205_s27 = scalar_lea.sflag (!%p1006_p7), [#allocation3], %s1052_s19 }
  0x23   : > { %s208_s18 = scalar_lea.vmem (!%p1006_p7), [#allocation2], %s613_s24 }
  0x24   : > { %887 = dma.done.wait (%p993_p3), %s205_s27, 256  }
  0x25   : > { %889 = vsyncadd (%p993_p3), %s205_s27, 4294967040 }
  0x26   : > { %891 = dma.done.wait (%p987_p1), [#allocation6], 2112  }
  0x27   : > { %893 = vsyncadd (%p987_p1), [#allocation6], 4294965184  ;;  %vm246_vm0 = vcmask 261120   ;;  %v244_v0 = vld [vmem:[%s208_s18] sm:$0xff]  ;;  %v245_v2 = vld [vmem:[%s208_s18 + $0x8] sm:$0xff]  ;;  %v928_v4 = vmov 32.0  }
  0x28   : > { %v247_v1 = vsel %vm246_vm0, %v244_v0, 0.0  ;;  %v250_v3 = vsel %vm246_vm0, %v245_v2, 0.0  ;;  %738 = vrcp.f32 %v928_v4  ;;  %v301_v21 = vld [vmem:[#allocation5 + $0x18] sm:$0xff]  ;;  %v300_v25 = vld [vmem:[#allocation5 + $0x10] sm:$0xff]  ;;  %v299_v29 = vld [vmem:[#allocation5 + $0x8] sm:$0xff]  ;;  %s616_s20 = sshll.u32 %s1052_s19, 6 }
  0x29   : > { %248 = vadd.xlane.f32.xlu0 %v247_v1  ;;  %v350_v22 = vld [vmem:[#allocation5 + $0x38] sm:$0xff]  ;;  %324 = vmatpush.msra.mxu0 %v301_v21  ;;  %v349_v26 = vld [vmem:[#allocation5 + $0x30] sm:$0xff]  ;;  %v348_v30 = vld [vmem:[#allocation5 + $0x28] sm:$0xff]  ;;  %vm341_vm8 = vcmask 257024   ;;  %s1087_s21 = scalar_lea.vmem [#allocation8], %s616_s20  ;;  %s643_s26 = sshll.u32 %s912_s15, 6 }
  0x2a   : > { %v394_v23 = vld [vmem:[#allocation5 + $0x58] sm:$0xff]  ;;  %368 = vmatpush.msra.mxu1 %v350_v22  ;;  %v393_v27 = vld [vmem:[#allocation5 + $0x50] sm:$0xff]  ;;  %v392_v31 = vld [vmem:[#allocation5 + $0x48] sm:$0xff]  ;;  %s493_s25 = scalar_lea.hbm %s1162_s3, %s643_s26  ;;  %s494_s15 = sshll.u32 %s1087_s21, 4  ;;  %s495_s15 = int_to_ptr.vmem [resolvable:$true] %s494_s15 }
  0x2b   : > { %v438_v24 = vld [vmem:[#allocation5 + $0x78] sm:$0xff]  ;;  %412 = vmatpush.msra.mxu2 %v394_v23  ;;  %325 = vmatpush.msra.mxu0 %v300_v25  ;;  %v437_v28 = vld [vmem:[#allocation5 + $0x70] sm:$0xff]  ;;  %v436_v32 = vld [vmem:[#allocation5 + $0x68] sm:$0xff]  ;;  %s496_s29 = sshll.u32 %s493_s25, 4  ;;  %s479_s30 = scalar_lea.sflag [#allocation4], %s1052_s19  ;;  %s497_s29 = int_to_ptr.hbm [resolvable:$true] %s496_s29 }
  0x2c   : > { %456 = vmatpush.msra.mxu3 %v438_v24  ;;  %369 = vmatpush.msra.mxu1 %v349_v26  ;;  %v298_v33 = vld [vmem:[#allocation5] sm:$0xff]  ;;  %s848_s4 = sshra.s32 %s497_s29, 4  ;;  %s854_s10 = scalar_lea.hbm %s1162_s3, 256  ;;  %s849_s4 = int_to_ptr.hbm [resolvable:$true] %s848_s4 }
  0x2d   : > { %413 = vmatpush.msra.mxu2 %v393_v27  ;;  %326 = vmatpush.msra.mxu0 %v299_v29  ;;  %v347_v34 = vld [vmem:[#allocation5 + $0x20] sm:$0xff]  ;;  %s850_s7 = scalar_lea.hbm %s849_s4, 64  ;;  %p855_p9 = scmp.lt.s32.totalorder %s849_s4, %s1162_s3 }
  0x2e   : > { %v739_v5 = vpop.eup %738  ;;  %457 = vmatpush.msra.mxu3 %v437_v28  ;;  %370 = vmatpush.msra.mxu1 %v348_v30  ;;  %v391_v35 = vld [vmem:[#allocation5 + $0x40] sm:$0xff]  ;;  %p851_p1 = scmp.ne.s32.totalorder %s849_s4, %s850_s7  ;;  %p856_p10 = scmp.lt.s32.totalorder %s854_s10, %s850_s7 }
  0x2f   : > { %v254_v6 = vmul.f32 32.0, %v739_v5  ;;  %vm258_vm1 = vweird.f32 %v739_v5  ;;  %414 = vmatpush.msra.mxu2 %v392_v31  ;;  %327 = vmatpush.msra.mxu0 %v298_v33  ;;  %v435_v36 = vld [vmem:[#allocation5 + $0x60] sm:$0xff] }
  0x30   : > { %458 = vmatpush.msra.mxu3 %v436_v32  ;;  %371 = vmatpush.msra.mxu1 %v347_v34  ;;  %v734_v59 = vld [vmem:[#allocation7] ss:$0 sm:$0xff]  ;;  %v735_v60 = vld [vmem:[#allocation7 + $0x1] ss:$0 sm:$0xff]  ;;  %v737_v4 = vld [vmem:[#allocation7 + $0x3] ss:$0 sm:$0xff]  ;;  %p852_p3 = pnand %p851_p1, %p1029_p0  ;;  %p857_p11 = por %p856_p10, %p855_p9 }
  0x31   : > { %251 = vadd.xlane.f32.xlu0 %v250_v3  ;;  %v255_v7 = vsub.f32 1.0, %v254_v6  ;;  %415 = vmatpush.msra.mxu2 %v391_v35  ;;  %v736_v3 = vld [vmem:[#allocation7 + $0x2] ss:$0 sm:$0xff] }
  0x32   : > { %459 = vmatpush.msra.mxu3 %v435_v36  ;;  %p853_p7 = pneg %p852_p3 }
  0x33   : > { %v256_v8 = vmul.f32 %v739_v5, %v255_v7 }
  0x34   : > { %p858_p12 = pnand %p857_p11, %p853_p7 }
  0x35   : > { %v257_v9 = vadd.f32 %v739_v5, %v256_v8 }
  0x37   : > { %v259_v10 = vsel %vm258_vm1, %v739_v5, %v257_v9 }
  0x9c   : > { %v249_v11 = vpop.xlane.xlu0 %248 }
  0x9d   : > { %v260_v12 = vmul.f32 %v259_v10, %v249_v11 }
  0x9f   : > { %v1066_v13 = vsub.f32 %v244_v0, %v260_v12 }
  0xa1   : > { %v264_v14 = vmul.f32 %v1066_v13, %v1066_v13 }
  0xa3   : > { %v266_v15 = vsel %vm246_vm0, %v264_v14, 0.0 }
  0xa4   : > { %267 = vadd.xlane.f32.xlu1 %v266_v15  ;;  %v252_v16 = vpop.xlane.xlu0 %251 }
  0xa5   : > { %v261_v17 = vmul.f32 %v259_v10, %v252_v16 }
  0xa7   : > { %v1071_v18 = vsub.f32 %v245_v2, %v261_v17 }
  0xa9   : > { %v265_v19 = vmul.f32 %v1071_v18, %v1071_v18 }
  0xab   : > { %v269_v20 = vsel %vm246_vm0, %v265_v19, 0.0 }
  0xac   : > { %270 = vadd.xlane.f32.xlu1 %v269_v20 }
 0x117   : > { %v268_v37 = vpop.xlane.xlu1 %267 }
 0x118   : > { %v272_v38 = vmul.f32 %v268_v37, %v259_v10 }
 0x11a   : > { %v274_v39 = vadd.f32 1e-05, %v272_v38 }
 0x11c   : > { %740 = vrsqrt.f32 %v274_v39  ;;  %vm282_vm3 = vweird.f32 %v274_v39 }
 0x11f   : > { %v271_v40 = vpop.xlane.xlu1 %270 }
 0x120   : > { %v273_v41 = vmul.f32 %v271_v40, %v259_v10 }
 0x122   : > { %v741_v42 = vpop.eup %740  ;;  %v275_v43 = vadd.f32 1e-05, %v273_v41 }
 0x123   : > { %v277_v44 = vmul.f32 %v741_v42, %v274_v39  ;;  %vm283_vm2 = vweird.f32 %v741_v42 }
 0x124   : > { %742 = vrsqrt.f32 %v275_v43  ;;  %vm284_vm4 = vmor %vm282_vm3, %vm283_vm2  ;;  %vm292_vm6 = vweird.f32 %v275_v43 }
 0x125   : > { %v278_v45 = vmul.f32 %v741_v42, %v277_v44 }
 0x127   : > { %v279_v46 = vmul.f32 0.5, %v278_v45 }
 0x129   : > { %v280_v47 = vsub.f32 1.5, %v279_v46 }
 0x12a   : > { %v743_v48 = vpop.eup %742 }
 0x12b   : > { %v281_v49 = vmul.f32 %v741_v42, %v280_v47  ;;  %v287_v50 = vmul.f32 %v743_v48, %v275_v43  ;;  %vm293_vm5 = vweird.f32 %v743_v48 }
 0x12c   : > { %vm294_vm7 = vmor %vm292_vm6, %vm293_vm5 }
 0x12d   : > { %v288_v51 = vmul.f32 %v743_v48, %v287_v50  ;;  %v285_v52 = vsel %vm284_vm4, %v741_v42, %v281_v49 }
 0x12e   : > { %v296_v53 = vmul.f32 %v285_v52, %v1066_v13 }
 0x12f   : > { %v289_v54 = vmul.f32 0.5, %v288_v51 }
 0x130   : > { %617 = vmatmul.msk.f32.vlgmr.msra.gmra.mxu0 %vm246_vm0, %v296_v53  ;;  %619 = vmatmul.msk.f32.vlgmr.msra.gmra.mxu1 %vm246_vm0, %v296_v53 }
 0x131   : > { %v290_v55 = vsub.f32 1.5, %v289_v54  ;;  %625 = vmatmul.msk.f32.vlgmr.msra.gmra.mxu2 %vm246_vm0, %v296_v53  ;;  %631 = vmatmul.msk.f32.vlgmr.msra.gmra.mxu3 %vm246_vm0, %v296_v53 }
 0x133   : > { %v291_v56 = vmul.f32 %v743_v48, %v290_v55 }
 0x135   : > { %v295_v57 = vsel %vm294_vm7, %v743_v48, %v291_v56 }
 0x136   : > { %v297_v58 = vmul.f32 %v295_v57, %v1071_v18 }
 0x138   : > { %618 = vmatmul.msk.f32.gmra.mxu0 %vm246_vm0, %v297_v58  ;;  %620 = vmatmul.msk.f32.gmra.mxu1 %vm246_vm0, %v297_v58 }
 0x139   : > { %626 = vmatmul.msk.f32.gmra.mxu2 %vm246_vm0, %v297_v58  ;;  %632 = vmatmul.msk.f32.gmra.mxu3 %vm246_vm0, %v297_v58 }
 0x1ad   : > { %v329_v61 = vpop.f32.mrf.mxu0  ;;  %v373_v62 = vpop.f32.mrf.mxu1 }
 0x1ae   : > { %v330_v63 = vadd.f32 %v734_v59, %v329_v61  ;;  %v374_v0 = vadd.f32 %v735_v60, %v373_v62 }
 0x1b0   : > { %v337_v1 = vrot.slane %v330_v63, 4  ;;  %342 = vst.msk [vmem:[%s1087_s21] sm:$0xf] %vm341_vm8, %v330_v63  ;;  %v381_v2 = vrot.slane %v374_v0, 4 }
 0x1b1   : > { %621 = vst.msk [vmem:[%s1087_s21 + $0x4] sm:$0xf] %vm341_vm8, %v374_v0 }
 0x1b2   : > { %343 = vst.msk [vmem:[%s1087_s21 + $0x8] sm:$0xf] %vm341_vm8, %v337_v1 }
 0x1b3   : > { %622 = vst.msk [vmem:[%s1087_s21 + $0xc] sm:$0xf] %vm341_vm8, %v381_v2 }
 0x1b4   : > { %v417_v5 = vpop.f32.mrf.mxu2  ;;  %v461_v6 = vpop.f32.mrf.mxu3 }
 0x1b5   : > { %v418_v7 = vadd.f32 %v736_v3, %v417_v5  ;;  %v462_v8 = vadd.f32 %v737_v4, %v461_v6  ;;  %v332_v9 = vpop.f32.mrf.mxu0  ;;  %v376_v10 = vpop.f32.mrf.mxu1 }
 0x1b6   : > { %v333_v11 = vadd.f32 %v734_v59, %v332_v9  ;;  %v377_v12 = vadd.f32 %v735_v60, %v376_v10 }
 0x1b7   : > { %v425_v13 = vrot.slane %v418_v7, 4  ;;  %627 = vst.msk [vmem:[%s1087_s21 + $0x20] sm:$0xf] %vm341_vm8, %v418_v7  ;;  %v469_v14 = vrot.slane %v462_v8, 4 }
 0x1b8   : > { %633 = vst.msk [vmem:[%s1087_s21 + $0x24] sm:$0xf] %vm341_vm8, %v462_v8  ;;  %v338_v15 = vrot.slane %v333_v11, 4  ;;  %v382_v16 = vrot.slane %v377_v12, 4 }
 0x1b9   : > { %628 = vst.msk [vmem:[%s1087_s21 + $0x28] sm:$0xf] %vm341_vm8, %v425_v13 }
 0x1ba   : > { %634 = vst.msk [vmem:[%s1087_s21 + $0x2c] sm:$0xf] %vm341_vm8, %v469_v14 }
 0x1bb   : > { %344 = vst.msk [vmem:[%s1087_s21 + $0x10] sm:$0xf] %vm341_vm8, %v333_v11 }
 0x1bc   : > { %345 = vst.msk [vmem:[%s1087_s21 + $0x18] sm:$0xf] %vm341_vm8, %v338_v15  ;;  %v420_v17 = vpop.f32.mrf.mxu2  ;;  %v464_v18 = vpop.f32.mrf.mxu3 }
 0x1bd   : > { %623 = vst.msk [vmem:[%s1087_s21 + $0x14] sm:$0xf] %vm341_vm8, %v377_v12  ;;  %v421_v19 = vadd.f32 %v736_v3, %v420_v17  ;;  %v465_v20 = vadd.f32 %v737_v4, %v464_v18 }
 0x1be   : > { %624 = vst.msk [vmem:[%s1087_s21 + $0x1c] sm:$0xf] %vm341_vm8, %v382_v16 }
 0x1bf   : > { %v426_v21 = vrot.slane %v421_v19, 4  ;;  %629 = vst.msk [vmem:[%s1087_s21 + $0x30] sm:$0xf] %vm341_vm8, %v421_v19  ;;  %v470_v22 = vrot.slane %v465_v20, 4 }
 0x1c0   : > { %635 = vst.msk [vmem:[%s1087_s21 + $0x34] sm:$0xf] %vm341_vm8, %v465_v20 }
 0x1c1   : > { %630 = vst.msk [vmem:[%s1087_s21 + $0x38] sm:$0xf] %vm341_vm8, %v426_v21 }
 0x1c2   : > { %636 = vst.msk [vmem:[%s1087_s21 + $0x3c] sm:$0xf] %vm341_vm8, %v470_v22 }
 0x1c3   : > { %861 = shalt.err (!%p858_p12)
}
 0x1c4   : > { %s929_s19 = smov 64   ;;  %s930_s18 = smov 4  }
 0x1c5   : > { %654 = dma.vmem_to_hbm [thread:$0]  (%p1029_p0), %s495_s15, 1024, %s497_s29, %s479_s30, %s929_s19, %s929_s19, %s930_s18  }
 0x1c6 PF: > { %p676_p13 = scmp.ge.s32.totalorder %s920_s17, 2  ;;  %s511_s20 = sand.u32 1, %s900_s12  }
 0x1c7   : > { %s512_s21 = scalar_lea.sflag [#allocation4], %s511_s20 }
 0x1c8   : > { %p668_p2 = pnand %p676_p13, %p998_p5 }
 0x1ca   : > { %p669_p4 = pneg %p668_p2 }
 0x1cc   : > { %895 = dma.done.wait (%p669_p4), %s512_s21, 1024  }
 0x1cd   : > { %897 = vsyncadd (%p669_p4), %s512_s21, 4294966272  ;;  %s20_s17 = sadd.s32 1, %s920_s17   ;;  %s1168_s12 = smov %s904_s13 }
 0x1ce   : > { %p17_p6 = scmp.ge.s32.totalorder %s20_s17, 6   ;;  %s1169_s13 = smov %s908_s14 }
 0x1cf   : > { %s1170_s14 = smov %s1039_s28  ;;  %s1171_s15 = smov %s916_s16 }
 0x1d0   : > { %s1172_s16 = smov %s1174_s11  ;;  %19 = sbr.rel (!%p17_p6) target bundleno = 7 (0x7), region = 94 }
 0x1d5   :  { %518 = vsyncpa [#allocation3], 1 }
 0x1d6   :  { %520 = vsyncpa [#allocation3 + $0x1], 1 }
 0x1d7   :  { %521 = vsyncpa [#allocation6], 1 }
 0x1d8   :  { %522 = vsyncpa [#allocation4], 1 }
 0x1d9   :  { %524 = vsyncpa [#allocation4 + $0x1], 1 }

</bundles_post_ra>
